<compile_context>
chip_gen: v6e
topology: v6e:2x2x1
jax: 0.10.0
libtpu: 0.0.40
codegen_flags: <defaults>
</compile_context>

<pallas_src>
import jax
import jax.numpy as jnp
from jax.experimental import pallas as pl
from jax.experimental.pallas import tpu as pltpu


def _make_lanet_kernel(C, mid):
    """Build the LANet kernel body, unrolled over the (tiny) channel dims."""
    off_b1 = C * mid
    off_w2 = off_b1 + mid
    off_b2 = off_w2 + mid

    def kernel(params_ref, x_ref, o_ref):
        # params_ref: SMEM f32[C*mid + mid + mid + 1]
        #   layout: w1 (row-major (C, mid)), b1 (mid,), w2 (mid,), b2 (1,)
        # x_ref: VMEM (C, TS, 128), o_ref: VMEM (TS, 128)

        # Hoist all scalar reads once (keeps sld + splat out of the FMA chain;
        # JAX does not CSE broadcast_in_dim).
        w1 = [[params_ref[c * mid + m] for m in range(mid)] for c in range(C)]
        b1 = [params_ref[off_b1 + m] for m in range(mid)]
        w2 = [params_ref[off_w2 + m] for m in range(mid)]
        b2 = params_ref[off_b2]

        # conv1: one dense (TS, 128) load per channel, reused for all hidden
        # channels; pure VPU multiply-add chain.
        h = [None] * mid
        for c in range(C):
            xc = x_ref[c].astype(jnp.float32)           # dense (TS, 128)
            for m in range(mid):
                t = w1[c][m] * xc
                h[m] = t if h[m] is None else h[m] + t

        # ReLU + conv2 (mid -> 1), fused on the same vregs.
        y = None
        for m in range(mid):
            hm = jnp.maximum(h[m] + b1[m], 0.0)          # ReLU (VPU)
            t = w2[m] * hm
            y = t if y is None else y + t
        if y is None:                                    # degenerate mid == 0
            y = jnp.zeros(o_ref.shape, jnp.float32)
        y = y + b2

        # sigmoid: exp + reciprocal route through the EUP slot.
        o_ref[...] = jax.nn.sigmoid(y).astype(o_ref.dtype)

    return kernel


def lanet_forward(x_nchw, w1, b1, w2, b2, *, max_tile_pixels=65536,
                  min_grid_steps=4):
    """x_nchw: (N, C, H, W).  w1: (C, MID), b1: (MID,), w2: (MID, 1), b2: (1,)."""
    N, C, H, W = x_nchw.shape
    mid = w1.shape[1]
    P = H * W
    LANE, SUB = 128, 8
    out_dtype = x_nchw.dtype

    # NCHW-native: merge spatial dims (pure reshape, no transpose).  Pad the
    # pixel axis to a multiple of 128 only when necessary (<=127 elements).
    P_pad = ((P + LANE - 1) // LANE) * LANE
    S = P_pad // LANE
    x_rows = x_nchw.reshape(N, C, P)
    if P_pad != P:
        x_rows = jnp.pad(x_rows, ((0, 0), (0, 0), (0, P_pad - P)))
    x4 = x_rows.reshape(N, C, S, LANE)                   # lane-dense layout

    # Rows-of-128 per grid step: large enough to amortize per-step pipeline
    # overhead, capped so the grid keeps >= min_grid_steps (v7x megacore).
    if S <= SUB:
        TS = S                                           # full (tiny) extent
    else:
        TS = min(max_tile_pixels // LANE, S)
        TS = max(SUB, (TS // SUB) * SUB)
        while N * pl.cdiv(S, TS) < min_grid_steps and TS > SUB:
            TS = max(SUB, (TS // 2 // SUB) * SUB)

    # All 13 parameters as SMEM scalars (no MXU, no VMEM weight tiles).
    params = jnp.concatenate([
        w1.reshape(-1).astype(jnp.float32),
        b1.reshape(-1).astype(jnp.float32),
        w2.reshape(-1).astype(jnp.float32),
        b2.reshape(-1).astype(jnp.float32),
    ])

    kernel = _make_lanet_kernel(C, mid)
    grid = (N, pl.cdiv(S, TS))

    out = pl.pallas_call(
        kernel,
        out_shape=jax.ShapeDtypeStruct((N, S, LANE), out_dtype),
        grid_spec=pltpu.PrefetchScalarGridSpec(
            num_scalar_prefetch=0,
            grid=grid,
            in_specs=[
                pl.BlockSpec(memory_space=pltpu.MemorySpace.SMEM),           # params
                pl.BlockSpec((None, C, TS, LANE), lambda n, j: (n, 0, j, 0)),  # x tile
            ],
            out_specs=pl.BlockSpec((None, TS, LANE), lambda n, j: (n, j, 0)),
        ),
        compiler_params=pltpu.CompilerParams(
            dimension_semantics=("parallel", "parallel"),
        ),
    )(params, x4)

    # Drop (minimal) pixel padding, restore spatial dims, mimic torch squeeze()
    # (torch's x.squeeze() drops the unit channel dim plus any other unit dims).
    out = out.reshape(N, P_pad)
    if P_pad != P:
        out = out[:, :P]
    out = out.reshape(N, H, W)
    return jnp.squeeze(out)


def _reference(x_nchw, w1, b1, w2, b2):
    # Pure-JAX reference of the same math (1x1 convs as einsum over channels).
    h = jnp.einsum("nchw,cm->nmhw", x_nchw, w1) + b1[None, :, None, None]
    h = jnp.maximum(h, 0.0)
    y = jnp.einsum("nmhw,mo->nohw", h, w2) + b2[None, :, None, None]
    return jnp.squeeze(jax.nn.sigmoid(y))


if __name__ == "__main__":
    key = jax.random.PRNGKey(0)
    N, C, H, W = 2, 4, 16, 16          # in_dim = 4
    r = 0.5
    mid = int(C * r)                   # mid_dim = 2

    k_x, k_w1, k_b1, k_w2, k_b2 = jax.random.split(key, 5)
    x = jax.random.normal(k_x, (N, C, H, W), dtype=jnp.float32)

    # Deterministic synthetic parameters (nn.Conv2d 1x1 weights, stored
    # transposed for right-matmul convention: (in, out)).
    w1 = jax.random.normal(k_w1, (C, mid), dtype=jnp.float32) * 0.5
    b1 = jax.random.normal(k_b1, (mid,), dtype=jnp.float32) * 0.1
    w2 = jax.random.normal(k_w2, (mid, 1), dtype=jnp.float32) * 0.5
    b2 = jax.random.normal(k_b2, (1,), dtype=jnp.float32) * 0.1

    out = lanet_forward(x, w1, b1, w2, b2)
    out = jax.block_until_ready(out)

    ref = _reference(x, w1, b1, w2, b2)
    assert out.shape == (N, H, W), out.shape
    assert jnp.allclose(out, ref, atol=1e-5, rtol=1e-5), "mismatch vs reference"

    print("KERNEL_OK")
</pallas_src>

<mosaic_0001>
module attributes {stable_mosaic.version = 11 : i64} {
  func.func @kernel(%arg0: i32, %arg1: i32, %arg2: memref<13xf32, #tpu.memory_space<smem>>, %arg3: memref<1x4x2x128xf32, #tpu.memory_space<vmem>>, %arg4: memref<1x2x128xf32, #tpu.memory_space<vmem>>) attributes {dimension_semantics = [#tpu.dimension_semantics<parallel>, #tpu.dimension_semantics<parallel>], iteration_bounds = array<i64: 2, 1>, scalar_prefetch = 0 : i64, scratch_operands = 0 : i64, tpu.core_type = #tpu.core_type<tc>, window_params = [{transform_indices = @transform_0, window_bounds = array<i64: 13>}, {transform_indices = @transform_1, window_bounds = array<i64: 1, 4, 2, 128>}, {transform_indices = @transform_2, window_bounds = array<i64: 1, 2, 128>}]} {
    %c0 = arith.constant 0 : index
    %0 = memref.load %arg2[%c0] : memref<13xf32, #tpu.memory_space<smem>>
    %c1 = arith.constant 1 : index
    %1 = memref.load %arg2[%c1] : memref<13xf32, #tpu.memory_space<smem>>
    %c2 = arith.constant 2 : index
    %2 = memref.load %arg2[%c2] : memref<13xf32, #tpu.memory_space<smem>>
    %c3 = arith.constant 3 : index
    %3 = memref.load %arg2[%c3] : memref<13xf32, #tpu.memory_space<smem>>
    %c4 = arith.constant 4 : index
    %4 = memref.load %arg2[%c4] : memref<13xf32, #tpu.memory_space<smem>>
    %c5 = arith.constant 5 : index
    %5 = memref.load %arg2[%c5] : memref<13xf32, #tpu.memory_space<smem>>
    %c6 = arith.constant 6 : index
    %6 = memref.load %arg2[%c6] : memref<13xf32, #tpu.memory_space<smem>>
    %c7 = arith.constant 7 : index
    %7 = memref.load %arg2[%c7] : memref<13xf32, #tpu.memory_space<smem>>
    %c8 = arith.constant 8 : index
    %8 = memref.load %arg2[%c8] : memref<13xf32, #tpu.memory_space<smem>>
    %c9 = arith.constant 9 : index
    %9 = memref.load %arg2[%c9] : memref<13xf32, #tpu.memory_space<smem>>
    %c10 = arith.constant 10 : index
    %10 = memref.load %arg2[%c10] : memref<13xf32, #tpu.memory_space<smem>>
    %c11 = arith.constant 11 : index
    %11 = memref.load %arg2[%c11] : memref<13xf32, #tpu.memory_space<smem>>
    %c12 = arith.constant 12 : index
    %12 = memref.load %arg2[%c12] : memref<13xf32, #tpu.memory_space<smem>>
    %c0_0 = arith.constant 0 : index
    %c0_1 = arith.constant 0 : index
    %c0_2 = arith.constant 0 : index
    %c0_3 = arith.constant 0 : index
    %13 = vector.load %arg3[%c0_0, %c0_1, %c0_2, %c0_3] : memref<1x4x2x128xf32, #tpu.memory_space<vmem>>, vector<1x1x2x128xf32>
    %14 = vector.shape_cast %13 : vector<1x1x2x128xf32> to vector<2x128xf32>
    %15 = vector.broadcast %0 : f32 to vector<2x128xf32>
    %16 = arith.mulf %15, %14 : vector<2x128xf32>
    %17 = vector.broadcast %1 : f32 to vector<2x128xf32>
    %18 = arith.mulf %17, %14 : vector<2x128xf32>
    %c0_4 = arith.constant 0 : index
    %c1_5 = arith.constant 1 : index
    %c0_6 = arith.constant 0 : index
    %c0_7 = arith.constant 0 : index
    %19 = vector.load %arg3[%c0_4, %c1_5, %c0_6, %c0_7] : memref<1x4x2x128xf32, #tpu.memory_space<vmem>>, vector<1x1x2x128xf32>
    %20 = vector.shape_cast %19 : vector<1x1x2x128xf32> to vector<2x128xf32>
    %21 = vector.broadcast %2 : f32 to vector<2x128xf32>
    %22 = arith.mulf %21, %20 : vector<2x128xf32>
    %23 = arith.addf %16, %22 : vector<2x128xf32>
    %24 = vector.broadcast %3 : f32 to vector<2x128xf32>
    %25 = arith.mulf %24, %20 : vector<2x128xf32>
    %26 = arith.addf %18, %25 : vector<2x128xf32>
    %c0_8 = arith.constant 0 : index
    %c2_9 = arith.constant 2 : index
    %c0_10 = arith.constant 0 : index
    %c0_11 = arith.constant 0 : index
    %27 = vector.load %arg3[%c0_8, %c2_9, %c0_10, %c0_11] : memref<1x4x2x128xf32, #tpu.memory_space<vmem>>, vector<1x1x2x128xf32>
    %28 = vector.shape_cast %27 : vector<1x1x2x128xf32> to vector<2x128xf32>
    %29 = vector.broadcast %4 : f32 to vector<2x128xf32>
    %30 = arith.mulf %29, %28 : vector<2x128xf32>
    %31 = arith.addf %23, %30 : vector<2x128xf32>
    %32 = vector.broadcast %5 : f32 to vector<2x128xf32>
    %33 = arith.mulf %32, %28 : vector<2x128xf32>
    %34 = arith.addf %26, %33 : vector<2x128xf32>
    %c0_12 = arith.constant 0 : index
    %c3_13 = arith.constant 3 : index
    %c0_14 = arith.constant 0 : index
    %c0_15 = arith.constant 0 : index
    %35 = vector.load %arg3[%c0_12, %c3_13, %c0_14, %c0_15] : memref<1x4x2x128xf32, #tpu.memory_space<vmem>>, vector<1x1x2x128xf32>
    %36 = vector.shape_cast %35 : vector<1x1x2x128xf32> to vector<2x128xf32>
    %37 = vector.broadcast %6 : f32 to vector<2x128xf32>
    %38 = arith.mulf %37, %36 : vector<2x128xf32>
    %39 = arith.addf %31, %38 : vector<2x128xf32>
    %40 = vector.broadcast %7 : f32 to vector<2x128xf32>
    %41 = arith.mulf %40, %36 : vector<2x128xf32>
    %42 = arith.addf %34, %41 : vector<2x128xf32>
    %43 = vector.broadcast %8 : f32 to vector<2x128xf32>
    %44 = arith.addf %39, %43 : vector<2x128xf32>
    %cst = arith.constant 0.000000e+00 : f32
    %45 = vector.broadcast %cst : f32 to vector<2x128xf32>
    %46 = arith.maximumf %44, %45 : vector<2x128xf32>
    %47 = vector.broadcast %10 : f32 to vector<2x128xf32>
    %48 = arith.mulf %47, %46 : vector<2x128xf32>
    %49 = vector.broadcast %9 : f32 to vector<2x128xf32>
    %50 = arith.addf %42, %49 : vector<2x128xf32>
    %cst_16 = arith.constant 0.000000e+00 : f32
    %51 = vector.broadcast %cst_16 : f32 to vector<2x128xf32>
    %52 = arith.maximumf %50, %51 : vector<2x128xf32>
    %53 = vector.broadcast %11 : f32 to vector<2x128xf32>
    %54 = arith.mulf %53, %52 : vector<2x128xf32>
    %55 = arith.addf %48, %54 : vector<2x128xf32>
    %56 = vector.broadcast %12 : f32 to vector<2x128xf32>
    %57 = arith.addf %55, %56 : vector<2x128xf32>
    %58 = arith.negf %57 : vector<2x128xf32>
    %59 = math.exp %58 : vector<2x128xf32>
    %cst_17 = arith.constant 1.000000e+00 : f32
    %60 = vector.broadcast %cst_17 : f32 to vector<2x128xf32>
    %61 = arith.addf %60, %59 : vector<2x128xf32>
    %62 = arith.divf %60, %61 : vector<2x128xf32>
    %c0_18 = arith.constant 0 : index
    %c0_19 = arith.constant 0 : index
    %c0_20 = arith.constant 0 : index
    %63 = vector.load %arg4[%c0_18, %c0_19, %c0_20] : memref<1x2x128xf32, #tpu.memory_space<vmem>>, vector<1x2x128xf32>
    %64 = vector.shape_cast %63 : vector<1x2x128xf32> to vector<2x128xf32>
    %65 = vector.shape_cast %62 : vector<2x128xf32> to vector<1x2x128xf32>
    tpu.vector_store %arg4[%c0_18, %c0_19, %c0_20], %65 {strides = array<i32>} : memref<1x2x128xf32, #tpu.memory_space<vmem>>, vector<1x2x128xf32>,
    return
  }
  func.func @transform_0(%arg0: i32, %arg1: i32) -> i32 {
    %c0_i32 = arith.constant 0 : i32
    %c0_i32_0 = arith.constant 0 : i32
    return %c0_i32 : i32
  }
  func.func @transform_1(%arg0: i32, %arg1: i32) -> (i32, i32, i32, i32) {
    %c0_i32 = arith.constant 0 : i32
    %c0_i32_0 = arith.constant 0 : i32
    %c0_i32_1 = arith.constant 0 : i32
    return %arg0, %c0_i32, %arg1, %c0_i32_0 : i32, i32, i32, i32
  }
  func.func @transform_2(%arg0: i32, %arg1: i32) -> (i32, i32, i32) {
    %c0_i32 = arith.constant 0 : i32
    %c0_i32_0 = arith.constant 0 : i32
    return %arg0, %arg1, %c0_i32 : i32, i32, i32
  }
}

</mosaic_0001>

<bundles_post_ra>
// kernel: tpu_custom_call.1
= control target key start
LH: loop header
LB: loop body
LE: loop exit
PB: predicated region body
PF: predicated region fallthrough
CT: control target
= control target key end

     0   :  { %s774_s0 = inlined_call_operand.hbm [shape: f32[13], index: 0, kind: input, shape index: {}]   ;;  %s775_s1 = inlined_call_operand.hbm [shape: f32[2,4,2,128], index: 1, kind: input, shape index: {}]   ;;  %s776_s2 = inlined_call_operand.hbm [shape: f32[2,2,128], index: 2, kind: output, shape index: {}]  }
   0x1   :  { %777 = sst [smem:[#allocation11_spill]] %s774_s0 }
   0x2   :  { %7 = vsyncpa [#allocation5], 0 }
   0x3   :  { %8 = vsyncpa [#allocation3], 0 }
   0x4   :  { %10 = vsyncpa [#allocation3 + $0x1], 0 }
   0x5   :  { %11 = vsyncpa [#allocation4], 0 }
   0x6   :  { %13 = vsyncpa [#allocation4 + $0x1], 0  ;;  %s618_s9 = smov 0   ;;  %s620_s10 = smov 0  }
   0x7   :  { %s622_s11 = smov 0   ;;  %s624_s12 = smov 0  }
   0x8   :  { %s626_s13 = smov 0   ;;  %s628_s14 = smov 0  }
   0x9 LB: > { %s361_s15 = sadd.s32 4294967295, %s596_s14   ;;  %s362_s16 = sadd.s32 4294967294, %s596_s14   ;;  %s596_s14 = sphi %s628_s14, %s19_s14   ;;  %s592_s13 = sphi %s626_s13, %s791_s13   ;;  %s588_s12 = sphi %s624_s12, %s790_s12   ;;  %s584_s11 = sphi %s622_s11, %s789_s11   ;;  %s580_s10 = sphi %s620_s10, %s788_s10   ;;  %s576_s9 = sphi %s618_s9, %s787_s9  }
   0xa   : > { %s61_s17 = sadd.s32 1, %s584_s11  ;;  %p68_p0 = scmp.ne.s32.totalorder %s584_s11, %s580_s10 }
   0xb   : > { %p69_p1 = scmp.eq.s32.totalorder %s596_s14, 0  ;;  %p74_p2 = scmp.ne.s32.totalorder %s580_s10, %s576_s9 }
   0xc   : > { %p656_p3 = scmp.eq.s32.totalorder %s361_s15, 0  ;;  %p100_p4 = scmp.eq.s32.totalorder %s361_s15, 1 }
   0xd   : > { %p70_p5 = por %p69_p1, %p68_p0  ;;  %p106_p6 = scmp.eq.s32.totalorder %s362_s16, 1 }
   0xe   : > { %p662_p7 = por %p656_p3, %p74_p2  ;;  %p666_p8 = por %p100_p4, %p68_p0 }
   0xf   : > { %p670_p9 = por %p106_p6, %p74_p2  ;;  %p363_p10 = scmp.ge.s32.totalorder %s596_s14, 1 }
  0x10   : > { %p113_p11 = scmp.lt.s32.totalorder %s596_s14, 3  ;;  %p415_p1 = scmp.lt.s32.totalorder %s596_s14, 2 }
  0x11   : > { %s781_s21 = scalar_select %p670_p9, 1, 0 }
  0x12   : > { %p677_p13 = pnand %p363_p10, %p113_p11  ;;  %s135_s23 = sand.u32 1, %s584_s11  }
  0x13   : > { %p685_p2 = pnand %p415_p1, %p70_p5  ;;  %s31_s25 = sadd.s32 1, %s592_s13 }
  0x14   : > { %p402_p0 = pneg %p677_p13  ;;  %s366_s26 = sshll.u32 %s135_s23, 3 }
  0x15   : > { %p33_p6 = scmp.ge.s32.totalorder %s31_s25, 2  ;;  %s598_s27 = smov [#allocation2]  }
  0x16   : > { %p403_p4 = pnand %p402_p0, %p656_p3  ;;  %s784_s0 = sld [smem:[#allocation11_spill]] }
  0x17   : > { %s793_s25 = smov (%p33_p6, %s31_s25), 0  ;;  %s393_s30 = sshll.u32 %s592_s13, 7 }
  0x18   : > { %s56_s3 = ssub.s32 %s592_s13, %s793_s25  ;;  %s146_s6 = scalar_lea.hbm %s775_s1, %s393_s30 }
  0x19   : > { %p59_p5 = scmp.eq.s32.totalorder %s56_s3, 0  ;;  %s139_s7 = scalar_lea.vmem [#allocation6], %s366_s26 }
  0x1a   : > { %s147_s8 = sshll.u32 %s139_s7, 4  ;;  %s136_s16 = scalar_lea.sflag [#allocation3], %s135_s23  ;;  %s148_s8 = int_to_ptr.vmem [resolvable:$true] %s147_s8 }
  0x1b   : > { %s706_s15 = scalar_select %p59_p5, %s584_s11, %s61_s17  }
  0x1c   : > { %405 = dma.hbm_to_smem (!%p403_p4), %s784_s0, 16, %s598_s27, [#allocation5]  }
  0x1d   : > { %p486_p10 = pneg %p685_p2  ;;  %s497_s27 = scalar_lea.vmem %s148_s8, 128 }
  0x1e   : > { %p498_p11 = scmp.ne.s32.totalorder %s148_s8, %s497_s27  ;;  %s599_s28 = smov [#allocation6]  }
  0x1f   : > { %s502_s29 = sshll.u32 %s599_s28, 4  ;;  %s503_s29 = int_to_ptr.vmem [resolvable:$false] %s502_s29 }
  0x20   : > { %p500_p1 = pnand %p498_p11, %p486_p10  ;;  %s504_s0 = scalar_lea.vmem %s503_s29, 256 }
  0x21   : > { %p505_p4 = scmp.lt.s32.totalorder %s148_s8, %s503_s29  ;;  %p506_p6 = scmp.lt.s32.totalorder %s504_s0, %s497_s27 }
  0x22   : > { %p501_p0 = pneg %p500_p1 }
  0x23   : > { %p507_p12 = por %p506_p6, %p505_p4 }
  0x25   : > { %p508_p9 = pnand %p507_p12, %p501_p0 }
  0x27   : > { %511 = shalt.err (!%p508_p9)
}
  0x28   : > { %s600_s26 = smov 32   ;;  %s601_s17 = smov 2  }
  0x29   : > { %409 = dma.hbm_to_vmem [thread:$0]  (!%p685_p2), %s146_s6, 128, %s148_s8, %s136_s16, %s600_s26, %s600_s26, %s601_s17  }
  0x2a   : > { %159 = sbr.rel (%p677_p13) target bundleno = 127 (0x7f), region = 28 }
  0x2f   : > { %563 = dma.done.wait (%p656_p3), [#allocation5], 16  }
  0x30   : > { %565 = vsyncadd (%p656_p3), [#allocation5], 4294967280  ;;  %s719_s0 = sand.u32 1, %s580_s10  }
  0x31   : > { %s371_s23 = sshll.u32 %s719_s0, 3  ;;  %s166_s30 = scalar_lea.sflag [#allocation3], %s719_s0 }
  0x32   : > { %s169_s3 = scalar_lea.vmem [#allocation6], %s371_s23 }
  0x33   : > { %567 = dma.done.wait (%p662_p7), %s166_s30, 128  }
  0x34   : > { %569 = vsyncadd (%p662_p7), %s166_s30, 4294967168 }
  0x35   : > { %174 = sfence }
  0x36   : > { %s191_s22 = sld [smem:[#allocation2]]  ;;  %v204_v0 = vld [vmem:[%s169_s3] sm:$0x3]  ;;  %v385_v2 = vld [vmem:[%s169_s3 + $0x2] sm:$0x3]  ;;  %s372_s26 = sshll.u32 %s719_s0, 1 }
  0x37   : > { %s373_s24 = sld [smem:[#allocation2 + $0x1]]  ;;  %v386_v7 = vld [vmem:[%s169_s3 + $0x4] sm:$0x3]  ;;  %v387_v12 = vld [vmem:[%s169_s3 + $0x6] sm:$0x3]  ;;  %s190_s17 = scalar_lea.vmem [#allocation7], %s372_s26 }
  0x38   : > { %s374_s4 = sld [smem:[#allocation2 + $0x2]]  ;;  %s268_s23 = sshll.u32 %s190_s17, 4  ;;  %s729_s23 = int_to_ptr.vmem [resolvable:$true] %s268_s23 }
  0x39   : > { %s375_s18 = sld [smem:[#allocation2 + $0x3]]  ;;  %s390_s30 = sshll.u32 %s588_s12, 5 }
  0x3a   : > { %s376_s5 = sld [smem:[#allocation2 + $0x4]] }
  0x3b   : > { %s377_s6 = sld [smem:[#allocation2 + $0x5]] }
  0x3c   : > { %s378_s7 = sld [smem:[#allocation2 + $0x6]]  ;;  %v205_v1 = vstv %s191_s22 }
  0x3d   : > { %s379_s8 = sld [smem:[#allocation2 + $0x7]]  ;;  %v206_v3 = vmul.f32 %v205_v1, %v204_v0  ;;  %v207_v4 = vstv %s373_s24  ;;  %s266_s24 = scalar_lea.hbm %s776_s2, %s390_s30 }
  0x3e   : > { %s380_s16 = sld [smem:[#allocation2 + $0x8]]  ;;  %v208_v5 = vmul.f32 %v207_v4, %v204_v0  ;;  %v211_v6 = vstv %s374_s4  ;;  %s254_s4 = scalar_lea.sflag [#allocation4], %s719_s0 }
  0x3f   : > { %s381_s19 = sld [smem:[#allocation2 + $0x9]]  ;;  %v212_v8 = vmul.f32 %v385_v2, %v211_v6  ;;  %v214_v9 = vstv %s375_s18  ;;  %s512_s18 = scalar_lea.vmem %s729_s23, 32 }
  0x40   : > { %s382_s27 = sld [smem:[#allocation2 + $0xa]]  ;;  %v215_v10 = vmul.f32 %v385_v2, %v214_v9  ;;  %v219_v11 = vstv %s376_s5  ;;  %p513_p3 = scmp.ne.s32.totalorder %s729_s23, %s512_s18 }
  0x41   : > { %s383_s28 = sld [smem:[#allocation2 + $0xb]]  ;;  %v213_v13 = vadd.f32 %v212_v8, %v206_v3  ;;  %v220_v14 = vmul.f32 %v386_v7, %v219_v11  ;;  %v222_v15 = vstv %s377_s6  ;;  %s602_s5 = smov [#allocation7]  }
  0x42   : > { %v216_v16 = vadd.f32 %v215_v10, %v208_v5  ;;  %v223_v17 = vmul.f32 %v386_v7, %v222_v15  ;;  %v227_v18 = vstv %s378_s7  ;;  %s384_s29 = sld [smem:[#allocation2 + $0xc]]  ;;  %p514_p7 = pnand %p513_p3, %p666_p8 }
  0x43   : > { %v221_v19 = vadd.f32 %v220_v14, %v213_v13  ;;  %v228_v20 = vmul.f32 %v387_v12, %v227_v18  ;;  %v230_v21 = vstv %s379_s8  ;;  %s516_s6 = sshll.u32 %s602_s5, 4  ;;  %s517_s6 = int_to_ptr.vmem [resolvable:$false] %s516_s6 }
  0x44   : > { %v224_v22 = vadd.f32 %v223_v17, %v216_v16  ;;  %v231_v23 = vmul.f32 %v387_v12, %v230_v21  ;;  %v233_v24 = vstv %s380_s16  ;;  %p515_p9 = pneg %p514_p7  ;;  %s518_s12 = scalar_lea.vmem %s517_s6, 64 }
  0x45   : > { %v229_v25 = vadd.f32 %v228_v20, %v221_v19  ;;  %v238_v26 = vstv %s381_s19  ;;  %p519_p12 = scmp.lt.s32.totalorder %s729_s23, %s517_s6  ;;  %p520_p13 = scmp.lt.s32.totalorder %s518_s12, %s512_s18 }
  0x46   : > { %v232_v27 = vadd.f32 %v231_v23, %v224_v22  ;;  %v236_v29 = vstv %s382_s27 }
  0x47   : > { %v234_v28 = vadd.f32 %v233_v24, %v229_v25  ;;  %v241_v32 = vstv %s383_s28  ;;  %p521_p2 = por %p520_p13, %p519_p12 }
  0x48   : > { %v239_v30 = vadd.f32 %v238_v26, %v232_v27  ;;  %v244_v36 = vstv %s384_s29 }
  0x49   : > { %v235_v31 = vmax.f32 %v234_v28, 0.0  ;;  %p522_p5 = pnand %p521_p2, %p515_p9 }
  0x4a   : > { %v240_v33 = vmax.f32 %v239_v30, 0.0 }
  0x4b   : > { %v237_v34 = vmul.f32 %v236_v29, %v235_v31 }
  0x4c   : > { %v242_v35 = vmul.f32 %v241_v32, %v240_v33 }
  0x4e   : > { %v243_v37 = vadd.f32 %v242_v35, %v237_v34 }
  0x50   : > { %v245_v38 = vadd.f32 %v244_v36, %v243_v37 }
  0x52   : > { %v388_v39 = vmul.f32 -1.442695, %v245_v38 }
  0x54   : > { %469 = vpow2.f32 %v388_v39 }
  0x61   : > { %v470_v40 = vpop.eup %469 }
  0x62   : > { %v249_v41 = vadd.f32 1.0, %v470_v40 }
  0x64   : > { %471 = vrcp.f32 %v249_v41 }
  0x71   : > { %v472_v42 = vpop.eup %471 }
  0x72   : > { %252 = vst [vmem:[%s190_s17] sm:$0x3] %v472_v42 }
  0x73   : > { %525 = shalt.err (!%p522_p5)
}
  0x74   : > { %s526_s7 = scalar_lea.hbm %s266_s24, 32  ;;  %s530_s16 = scalar_lea.hbm %s776_s2, 64 }
  0x75   : > { %p527_p10 = scmp.ne.s32.totalorder %s266_s24, %s526_s7  ;;  %p531_p0 = scmp.lt.s32.totalorder %s266_s24, %s776_s2 }
  0x76   : > { %p532_p4 = scmp.lt.s32.totalorder %s530_s16, %s526_s7 }
  0x77   : > { %p528_p11 = pnand %p527_p10, %p666_p8 }
  0x78   : > { %p533_p6 = por %p532_p4, %p531_p0 }
  0x79   : > { %p529_p1 = pneg %p528_p11 }
  0x7b   : > { %p534_p3 = pnand %p533_p6, %p529_p1 }
  0x7d   : > { %537 = shalt.err (!%p534_p3)
}
  0x7e   : > { %400 = dma.vmem_to_hbm [thread:$0]  (%p666_p8), %s729_s23, 32, %s266_s24, %s254_s4  }
  0x7f PF: > { %s280_s28 = sand.u32 1, %s576_s9   ;;  %p785_p7 = scmp.ne.s32.totalorder %s781_s21, 0 }
  0x80   : > { %p786_p9 = scmp.ge.s32.totalorder %s596_s14, 2  ;;  %s281_s29 = scalar_lea.sflag [#allocation4], %s280_s28 }
  0x82   : > { %p411_p12 = pnand %p786_p9, %p785_p7 }
  0x84   : > { %p412_p13 = pneg %p411_p12 }
  0x86   : > { %571 = dma.done.wait (%p412_p13), %s281_s29, 32  }
  0x87   : > { %573 = vsyncadd (%p412_p13), %s281_s29, 4294967264  ;;  %s19_s14 = sadd.s32 1, %s596_s14   ;;  %s787_s9 = smov %s580_s10 }
  0x88   : > { %p16_p2 = scmp.ge.s32.totalorder %s19_s14, 4   ;;  %s788_s10 = smov %s584_s11 }
  0x89   : > { %s789_s11 = smov %s706_s15  ;;  %s790_s12 = smov %s592_s13 }
  0x8a   : > { %s791_s13 = smov %s793_s25  ;;  %18 = sbr.rel (!%p16_p2) target bundleno = 9 (0x9), region = 81 }
  0x8f   :  { %286 = vsyncpa [#allocation3], 1 }
  0x90   :  { %288 = vsyncpa [#allocation3 + $0x1], 1 }
  0x91   :  { %289 = vsyncpa [#allocation4], 1 }
  0x92   :  { %291 = vsyncpa [#allocation4 + $0x1], 1 }
  0x93   :  { %292 = vsyncpa [#allocation5], 1 }
  0x94   :  { %294 = vsyncpa [#allocation5 + $0x1], 1 }

</bundles_post_ra>
